<compile_context>
chip_gen: v5e
topology: v5e:2x2
jax: 0.10.0
libtpu: 0.0.40
codegen_flags: <defaults>
</compile_context>

<pallas_src>
import functools

import jax
import jax.numpy as jnp
import numpy as np
from jax.experimental import pallas as pl
from jax.experimental.pallas import tpu as pltpu


# ----------------------------------------------------------------------------
# Pallas kernels
# ----------------------------------------------------------------------------
def fused_matmul_kernel(x_ref, w_ref, s_ref, t_ref, o_ref, *, relu):
    # o = act((x @ w) * s + t); conv bias / BN affine / int8 dequant scale folded into (s,t).
    w = w_ref[...]
    if w.dtype != jnp.bfloat16:
        # int8 weights: widen in-register (HBM streamed half the bytes; scale lives in s).
        w = w.astype(jnp.bfloat16)
    acc = jnp.dot(x_ref[...], w, preferred_element_type=jnp.float32)
    y = acc * s_ref[...] + t_ref[...]          # f32 epilogue
    if relu:
        y = jnp.maximum(y, 0.0)
    o_ref[...] = y.astype(o_ref.dtype)


def fused_fc_bn_softmaxT_kernel(x_ref, w_ref, s_ref, t_ref, o_ref, *, invT, n_valid):
    # Final layer: o = softmaxT((x @ w) * s + t), pad lanes excluded from the denominator.
    acc = jnp.dot(x_ref[...], w_ref[...], preferred_element_type=jnp.float32)
    y = acc * s_ref[...] + t_ref[...]
    # Exactly like the PyTorch module: exp(x/T) / sum(exp(x/T)), NO max subtraction.
    lane = jax.lax.broadcasted_iota(jnp.int32, y.shape, dimension=1)
    e = jnp.where(lane < n_valid, jnp.exp(y * invT), 0.0)   # mask pad lanes out of the sum
    denom = jnp.sum(e, axis=1, keepdims=True)
    o_ref[...] = (e / denom).astype(o_ref.dtype)            # exact divide: rows sum to 1


def maxpool_kernel(x_ref, o_ref, *, k, stride):
    # Valid k x k / stride max-pool: k*k strided window reads straight from the ref and a
    # single lane-dense store of the decimated map (no stride-1 intermediate).
    _, Ho, Wo, _ = o_ref.shape
    out = None
    for dh in range(k):
        for dw in range(k):
            win = x_ref[:, pl.ds(dh, Ho, stride=stride), pl.ds(dw, Wo, stride=stride), :]
            out = win if out is None else jnp.maximum(out, win)
    o_ref[...] = out


# ----------------------------------------------------------------------------
# Tiling / VMEM helpers
# ----------------------------------------------------------------------------
def _pick_tiles(M, K, Npad, w_bytes):
    # M tile: 128 when it divides M (v5e-friendly vreg pressure, more grid steps),
    # otherwise the whole (small) M.
    tm = 128 if M % 128 == 0 else M
    # N tile: largest of {512, 256, 128} dividing Npad whose double-buffered weight tile
    # stays <= 8 MiB (fc1/fc2 -> 512, i.e. fc2 grid (1, 8) with ~2 MiB int8 tiles).
    tn = Npad
    for cand in (512, 256, 128):
        if Npad % cand == 0 and 2 * K * cand * w_bytes <= (8 << 20):
            tn = cand
            break
    # Megacore (v7x has 2 TensorCores): never leave a (1, 1) grid if N can be split.
    if (M // tm) * (Npad // tn) < 2 and Npad % 256 == 0:
        tn = Npad // 2
    return tm, tn


def _vmem_limit(tm, K, tn, x_bytes, w_bytes, out_bytes):
    # double-buffered inputs + double-buffered output + slack, capped for v7x (64 MiB phys).
    need = 2 * (tm * K * x_bytes + K * tn * w_bytes + 2 * tn * 4 + tm * tn * out_bytes)
    return int(min(48 << 20, max(16 << 20, need + (4 << 20))))


# ----------------------------------------------------------------------------
# Wrappers around pallas_call
# ----------------------------------------------------------------------------
def fused_linear(x, w, s, t, *, relu, out_dtype=jnp.float32, keep_padded=False):
    """x: (M, K); w: (K, N) bf16 or int8; s/t: (N,) f32 -> (M, N) [or (M, Npad)]."""
    M, K = x.shape
    Kw, N = w.shape
    assert Kw == K
    x = x.astype(jnp.bfloat16)
    s = s.astype(jnp.float32)
    t = t.astype(jnp.float32)

    # Pad N to a multiple of 128 so every kernel store is lane-dense.
    Npad = ((N + 127) // 128) * 128
    if Npad != N:
        w = jnp.pad(w, ((0, 0), (0, Npad - N)))
        s = jnp.pad(s, (0, Npad - N), constant_values=1.0)
        t = jnp.pad(t, (0, Npad - N))

    if w.dtype == jnp.int8:
        w_bytes = 1
    else:
        w = w.astype(jnp.bfloat16)
        w_bytes = 2

    tm, tn = _pick_tiles(M, K, Npad, w_bytes)
    grid = (M // tm, Npad // tn)
    out_bytes = jnp.dtype(out_dtype).itemsize

    out = pl.pallas_call(
        functools.partial(fused_matmul_kernel, relu=relu),
        out_shape=jax.ShapeDtypeStruct((M, Npad), out_dtype),
        grid=grid,
        in_specs=[
            pl.BlockSpec((tm, K), lambda i, j: (i, 0)),
            pl.BlockSpec((K, tn), lambda i, j: (0, j)),
            pl.BlockSpec((1, tn), lambda i, j: (0, j)),
            pl.BlockSpec((1, tn), lambda i, j: (0, j)),
        ],
        out_specs=pl.BlockSpec((tm, tn), lambda i, j: (i, j)),
        compiler_params=pltpu.CompilerParams(
            dimension_semantics=("parallel", "parallel"),
            vmem_limit_bytes=_vmem_limit(tm, K, tn, 2, w_bytes, out_bytes),
        ),
    )(x, w, s.reshape(1, -1), t.reshape(1, -1))

    if not keep_padded and Npad != N:
        out = out[:, :N]
    return out


def fc3_bn_softmaxT(x, w, s, t, T):
    """softmaxT((x @ w) * s + t): (M, K) -> (M, N) f32, single fused single-block kernel."""
    M, K = x.shape
    Kw, N = w.shape
    assert Kw == K
    Npad = ((N + 127) // 128) * 128
    x = x.astype(jnp.bfloat16)
    w = jnp.pad(w.astype(jnp.bfloat16), ((0, 0), (0, Npad - N)))
    s = jnp.pad(s.astype(jnp.float32), (0, Npad - N), constant_values=1.0)
    t = jnp.pad(t.astype(jnp.float32), (0, Npad - N))
    out = pl.pallas_call(
        functools.partial(fused_fc_bn_softmaxT_kernel, invT=float(1.0 / T), n_valid=N),
        out_shape=jax.ShapeDtypeStruct((M, Npad), jnp.float32),
    )(x, w, s.reshape(1, -1), t.reshape(1, -1))
    return out[:, :N]


def maxpool2d(x, k=3, stride=2):
    """x: (N, H, W, C) -> (N, Ho, Wo, C), valid pooling like nn.MaxPool2d(3, 2)."""
    N, H, W, C = x.shape
    Ho = (H - k) // stride + 1
    Wo = (W - k) // stride + 1
    return pl.pallas_call(
        functools.partial(maxpool_kernel, k=k, stride=stride),
        out_shape=jax.ShapeDtypeStruct((N, Ho, Wo, C), x.dtype),
    )(x)


# ----------------------------------------------------------------------------
# Glue: im2col + BN folding
# ----------------------------------------------------------------------------
def im2col(x, k, stride, pad):
    """(N, H, W, C) bf16 -> ((N*Ho*Wo, C*k*k), Ho, Wo). Channel-major patches, one XLA op."""
    n, _, _, c = x.shape
    patches = jax.lax.conv_general_dilated_patches(
        x, filter_shape=(k, k), window_strides=(stride, stride),
        padding=((pad, pad), (pad, pad)),
        dimension_numbers=("NHWC", "HWIO", "NHWC"))
    _, Ho, Wo, _ = patches.shape
    return patches.reshape(n * Ho * Wo, c * k * k), Ho, Wo
    # TODO(synk): fold patch extraction into the matmul BlockSpecs (pl.Element index_map)
    # to avoid the k*k HBM duplication at realistic batch sizes.


def bn_fold(gamma, beta, mean, var, eps=1e-5):
    s = gamma / jnp.sqrt(var + eps)
    t = beta - mean * s
    return s, t


def conv_bn_relu(x, conv_params, bn_params, *, k, stride, pad, keep_padded=False):
    w, b = conv_params                         # w: (cin, kh, kw, cout) f32, b: (cout,) f32
    cin = w.shape[0]
    cout = w.shape[-1]
    c_data = x.shape[-1]
    if c_data > cin:                           # input carries zero lane-pad channels
        w = jnp.pad(w, ((0, c_data - cin), (0, 0), (0, 0), (0, 0)))
    w2d = w.reshape(c_data * k * k, cout).astype(jnp.bfloat16)   # matches patch layout
    s, t = bn_fold(*bn_params)
    t = b * s + t                              # fold conv bias into the BN shift
    n = x.shape[0]
    patches, Ho, Wo = im2col(x, k, stride, pad)
    y = fused_linear(patches, w2d, s, t, relu=True,
                     out_dtype=jnp.bfloat16, keep_padded=keep_padded)
    return y.reshape(n, Ho, Wo, -1)


# ----------------------------------------------------------------------------
# Parameters (deterministic synthetic init, shapes from AlexNet.__init__)
# ----------------------------------------------------------------------------
def init_params(key, in_channel=3, num_classes=10):
    keys = jax.random.split(key, 64)
    it = iter(keys)

    def conv_p(cin, cout, k):
        # Stored (cin, kh, kw, cout): matches conv_general_dilated_patches' channel-major
        # patch layout used by im2col().
        fan_in = k * k * cin
        w = jax.random.normal(next(it), (cin, k, k, cout), jnp.float32) / np.sqrt(fan_in)
        b = 0.01 * jax.random.normal(next(it), (cout,), jnp.float32)
        return w, b

    def bn_p(c):
        gamma = 1.0 + 0.1 * jax.random.normal(next(it), (c,), jnp.float32)
        beta = 0.1 * jax.random.normal(next(it), (c,), jnp.float32)
        mean = 0.05 * jax.random.normal(next(it), (c,), jnp.float32)
        var = jnp.abs(1.0 + 0.1 * jax.random.normal(next(it), (c,), jnp.float32))
        return gamma, beta, mean, var

    def lin_q8(cin, cout):
        # int8 weight + per-output-column dequant scale (folded into the matmul epilogue).
        w = jax.random.normal(next(it), (cin, cout), jnp.float32) / np.sqrt(cin)
        b = 0.01 * jax.random.normal(next(it), (cout,), jnp.float32)
        scale = jnp.maximum(jnp.max(jnp.abs(w), axis=0), 1e-8) / 127.0
        q = jnp.clip(jnp.round(w / scale), -127, 127).astype(jnp.int8)
        return q, scale, b

    def lin_p(cin, cout):
        w = jax.random.normal(next(it), (cin, cout), jnp.float32) / np.sqrt(cin)
        b = 0.01 * jax.random.normal(next(it), (cout,), jnp.float32)
        return w.astype(jnp.bfloat16), b

    return {
        "conv1": conv_p(in_channel, 64, 3),   "bn1": bn_p(64),
        "conv2": conv_p(64, 192, 5),          "bn2": bn_p(192),
        "conv3": conv_p(192, 384, 3),         "bn3": bn_p(384),
        "conv4": conv_p(384, 256, 3),         "bn4": bn_p(256),
        "conv5": conv_p(256, 256, 3),         "bn5": bn_p(256),
        "fc1": lin_q8(256, 4096),
        "fc2": lin_q8(4096, 4096),
        "fc3": lin_p(4096, num_classes),
        "bn_fc": bn_p(num_classes),
    }


# ----------------------------------------------------------------------------
# Forward pass
# ----------------------------------------------------------------------------
def alexnet_forward(x_nchw, params, T=1.0):
    # NCHW -> NHWC once; activations run in bf16 (every kernel accumulates/epilogues in f32).
    x = jnp.transpose(x_nchw, (0, 2, 3, 1)).astype(jnp.bfloat16)
    N = x.shape[0]

    # features (BatchNorm in inference mode, folded to per-channel affine).
    # conv1/conv2 keep their outputs zero-padded to the next 128 multiple through the pools
    # so pool / patch / matmul stores are lane-dense; the next conv's weight rows for the
    # pad channels are zero, so the math is unchanged.
    x = conv_bn_relu(x, params["conv1"], params["bn1"], k=3, stride=2, pad=1,
                     keep_padded=True)                              # (N, 16, 16, 128)
    x = maxpool2d(x)                                                # (N, 7, 7, 128)
    x = conv_bn_relu(x, params["conv2"], params["bn2"], k=5, stride=1, pad=2,
                     keep_padded=True)                              # (N, 7, 7, 256)
    x = maxpool2d(x)                                                # (N, 3, 3, 256)
    x = conv_bn_relu(x, params["conv3"], params["bn3"], k=3, stride=1, pad=1)  # (N,3,3,384)
    x = conv_bn_relu(x, params["conv4"], params["bn4"], k=3, stride=1, pad=1)  # (N,3,3,256)
    x = conv_bn_relu(x, params["conv5"], params["bn5"], k=3, stride=1, pad=1)  # (N,3,3,256)
    x = maxpool2d(x)                                                # (N, 1, 1, 256)

    # fc head (Dropout(p=0.2) is identity in eval mode); fc1/fc2 weights stream as int8.
    x = x.reshape(N, -1)                                            # (N, 256)
    wq, scale, b = params["fc1"]
    x = fused_linear(x, wq, scale, b, relu=True, out_dtype=jnp.bfloat16)
    wq, scale, b = params["fc2"]
    x = fused_linear(x, wq, scale, b, relu=True, out_dtype=jnp.bfloat16)

    # fc3 + BatchNorm1d + temperature softmax fused into one kernel.
    w3, b3 = params["fc3"]
    s, t = bn_fold(*params["bn_fc"])
    t = b3 * s + t                                                  # fold fc3 bias into BN shift
    return fc3_bn_softmaxT(x, w3, s, t, T)
    # TODO(synk): the whole fc head (fc1 -> fc2 -> fc3+softmax) could be one pallas_call
    # streaming fc2's weight over an N grid; kept as three calls for clarity.


# ----------------------------------------------------------------------------
# Main
# ----------------------------------------------------------------------------
if __name__ == "__main__":
    key = jax.random.PRNGKey(0)
    k_params, k_x = jax.random.split(key)

    params = init_params(k_params, in_channel=3, num_classes=10)
    # 32x32 inputs make the flattened feature exactly 256, matching Linear(256, 4096).
    x = jax.random.normal(k_x, (2, 3, 32, 32), jnp.float32)        # NCHW like PyTorch

    out = alexnet_forward(x, params, T=1.0)
    out = jax.block_until_ready(out)

    assert out.shape == (2, 10), out.shape
    out_np = np.asarray(out, dtype=np.float64)
    assert np.all(np.isfinite(out_np))
    assert np.all(out_np >= 0.0)
    row_sums = out_np.sum(axis=1)
    # Exact in-kernel divide -> rows sum to 1 within f32 rounding.
    assert np.allclose(row_sums, 1.0, atol=1e-3), row_sums

    print("KERNEL_OK")
</pallas_src>

<mosaic_0001>
module attributes {stable_mosaic.version = 11 : i64} {
  func.func @fused_matmul_kernel(%arg0: i32, %arg1: i32, %arg2: memref<128x27xbf16, #tpu.memory_space<vmem>>, %arg3: memref<27x128xbf16, #tpu.memory_space<vmem>>, %arg4: memref<1x128xf32, #tpu.memory_space<vmem>>, %arg5: memref<1x128xf32, #tpu.memory_space<vmem>>, %arg6: memref<128x128xbf16, #tpu.memory_space<vmem>>) attributes {dimension_semantics = [#tpu.dimension_semantics<parallel>, #tpu.dimension_semantics<parallel>], iteration_bounds = array<i64: 4, 1>, scalar_prefetch = 0 : i64, scratch_operands = 0 : i64, tpu.core_type = #tpu.core_type<tc>, window_params = [{transform_indices = @transform_0, window_bounds = array<i64: 128, 27>}, {transform_indices = @transform_1, window_bounds = array<i64: 27, 128>}, {transform_indices = @transform_2, window_bounds = array<i64: 1, 128>}, {transform_indices = @transform_3, window_bounds = array<i64: 1, 128>}, {transform_indices = @transform_4, window_bounds = array<i64: 128, 128>}]} {
    %c0 = arith.constant 0 : index
    %c0_0 = arith.constant 0 : index
    %0 = vector.load %arg3[%c0, %c0_0] : memref<27x128xbf16, #tpu.memory_space<vmem>>, vector<27x128xbf16>
    %c0_1 = arith.constant 0 : index
    %c0_2 = arith.constant 0 : index
    %1 = vector.load %arg2[%c0_1, %c0_2] : memref<128x27xbf16, #tpu.memory_space<vmem>>, vector<128x27xbf16>
    %cst = arith.constant dense<0.000000e+00> : vector<128x128xf32>
    %2 = tpu.matmul %1, %0, %cst {dimension_numbers = #tpu.dot_dimension_numbers<[1], [0], [0], [1], [0, 0, 1, 1], [], []>} : vector<128x27xbf16>, vector<27x128xbf16>, vector<128x128xf32> -> vector<128x128xf32>
    %c0_3 = arith.constant 0 : index
    %c0_4 = arith.constant 0 : index
    %3 = vector.load %arg4[%c0_3, %c0_4] : memref<1x128xf32, #tpu.memory_space<vmem>>, vector<1x128xf32>
    %4 = vector.broadcast %3 : vector<1x128xf32> to vector<128x128xf32>
    %5 = arith.mulf %2, %4 : vector<128x128xf32>
    %c0_5 = arith.constant 0 : index
    %c0_6 = arith.constant 0 : index
    %6 = vector.load %arg5[%c0_5, %c0_6] : memref<1x128xf32, #tpu.memory_space<vmem>>, vector<1x128xf32>
    %7 = vector.broadcast %6 : vector<1x128xf32> to vector<128x128xf32>
    %8 = arith.addf %5, %7 : vector<128x128xf32>
    %cst_7 = arith.constant 0.000000e+00 : f32
    %9 = vector.broadcast %cst_7 : f32 to vector<128x128xf32>
    %10 = arith.maximumf %8, %9 : vector<128x128xf32>
    %11 = arith.truncf %10 : vector<128x128xf32> to vector<128x128xbf16>
    %c0_8 = arith.constant 0 : index
    %c0_9 = arith.constant 0 : index
    %12 = vector.load %arg6[%c0_8, %c0_9] : memref<128x128xbf16, #tpu.memory_space<vmem>>, vector<128x128xbf16>
    tpu.vector_store %arg6[%c0_8, %c0_9], %11 {strides = array<i32>} : memref<128x128xbf16, #tpu.memory_space<vmem>>, vector<128x128xbf16>,
    return
  }
  func.func @transform_0(%arg0: i32, %arg1: i32) -> (i32, i32) {
    %c0_i32 = arith.constant 0 : i32
    %c0_i32_0 = arith.constant 0 : i32
    return %arg0, %c0_i32 : i32, i32
  }
  func.func @transform_1(%arg0: i32, %arg1: i32) -> (i32, i32) {
    %c0_i32 = arith.constant 0 : i32
    %c0_i32_0 = arith.constant 0 : i32
    return %c0_i32, %arg1 : i32, i32
  }
  func.func @transform_2(%arg0: i32, %arg1: i32) -> (i32, i32) {
    %c0_i32 = arith.constant 0 : i32
    %c0_i32_0 = arith.constant 0 : i32
    return %c0_i32, %arg1 : i32, i32
  }
  func.func @transform_3(%arg0: i32, %arg1: i32) -> (i32, i32) {
    %c0_i32 = arith.constant 0 : i32
    %c0_i32_0 = arith.constant 0 : i32
    return %c0_i32, %arg1 : i32, i32
  }
  func.func @transform_4(%arg0: i32, %arg1: i32) -> (i32, i32) {
    %c0_i32 = arith.constant 0 : i32
    return %arg0, %arg1 : i32, i32
  }
}

</mosaic_0001>

<bundles_post_ra>
// kernel: tpu_custom_call.1
= control target key start
LH: loop header
LB: loop body
LE: loop exit
PB: predicated region body
PF: predicated region fallthrough
CT: control target
= control target key end

     0   :  { %9 = vsyncpa [#allocation3], 0  ;;  %s1093_s0 = inlined_call_operand.vmem [shape: bf16[512,27], index: 0, kind: input, shape index: {}]   ;;  %s1094_s1 = inlined_call_operand.vmem [shape: bf16[27,128], index: 1, kind: input, shape index: {}]   ;;  %s1095_s2 = inlined_call_operand.vmem [shape: f32[1,128], index: 2, kind: input, shape index: {}]   ;;  %s1096_s3 = inlined_call_operand.vmem [shape: f32[1,128], index: 3, kind: input, shape index: {}]   ;;  %s1097_s4 = inlined_call_operand.hbm [shape: bf16[512,128], index: 4, kind: output, shape index: {}]  }
   0x1   :  { %11 = vsyncpa [#allocation3 + $0x1], 0  ;;  %s923_s15 = smov 0   ;;  %s925_s16 = smov 0  }
   0x2   :  { %s927_s17 = smov 0   ;;  %s929_s18 = smov 0  }
   0x3   :  { %s931_s19 = smov 0   ;;  %s933_s20 = smov 0  }
   0x4 LB: > { %s627_s21 = sadd.s32 4294967295, %s893_s20   ;;  %s628_s22 = sadd.s32 4294967294, %s893_s20   ;;  %s893_s20 = sphi %s933_s20, %s17_s20   ;;  %s889_s19 = sphi %s931_s19, %s1104_s19   ;;  %s885_s18 = sphi %s929_s18, %s1103_s18   ;;  %s881_s17 = sphi %s927_s17, %s1102_s17   ;;  %s877_s16 = sphi %s925_s16, %s1101_s16   ;;  %s873_s15 = sphi %s923_s15, %s1100_s15  }
   0x5   : > { %s29_s23 = sadd.s32 1, %s889_s19  ;;  %s142_s24 = sadd.s32 1, %s881_s17 }
   0x6   : > { %p31_p0 = scmp.ge.s32.totalorder %s29_s23, 4  ;;  %p152_p1 = scmp.ne.s32.totalorder %s881_s17, %s877_s16 }
   0x7   : > { %p153_p2 = scmp.eq.s32.totalorder %s627_s21, 3  ;;  %p158_p3 = scmp.ne.s32.totalorder %s877_s16, %s873_s15 }
   0x8   : > { %s1106_s23 = smov (%p31_p0, %s29_s23), 0  ;;  %p159_p5 = scmp.eq.s32.totalorder %s628_s22, 3 }
   0x9   : > { %p963_p4 = por %p153_p2, %p152_p1  ;;  %s137_s26 = ssub.s32 %s889_s19, %s1106_s23 }
   0xa   : > { %p634_p6 = scmp.ge.s32.totalorder %s893_s20, 1  ;;  %p140_p7 = scmp.eq.s32.totalorder %s137_s26, 0 }
   0xb   : > { %p970_p8 = por %p159_p5, %p158_p3  ;;  %p205_p9 = scmp.lt.s32.totalorder %s893_s20, 5 }
   0xc   : > { %s976_s28 = scalar_select %p140_p7, %s881_s17, %s142_s24  }
   0xd   : > { %p206_p10 = pnand %p634_p6, %p205_p9 }
   0xe   : > { %s636_s7 = sshll.u32 (!%p206_p10), %s885_s18, 4  ;;  %s238_s26 = sand.u32 (!%p206_p10), 1, %s877_s16  }
   0xf   : > { %209 = sbr.rel (%p206_p10) target bundleno = 203 (0xcb), region = 36  ;;  %p242_p11 = scmp.lt.s32.totalorder (!%p206_p10), %s636_s7, 63 }
  0x10   : > { %s635_s29 = sshll.u32 (!%p206_p10), %s238_s26, 6  ;;  %s701_s5 = sshll.u32 (!%p206_p10), %s885_s18, 6 }
  0x11   : > { %s1026_s30 = scalar_lea.vmem (!%p206_p10), [#allocation2], %s635_s29  ;;  %s512_s8 = scalar_lea.hbm (!%p206_p10), %s1097_s4, %s701_s5 }
  0x12   : > { %s513_s18 = sshll.u32 (!%p206_p10), %s1026_s30, 4  ;;  %s515_s9 = sshll.u32 (!%p206_p10), %s512_s8, 4  ;;  %s514_s18 = int_to_ptr.vmem [resolvable:$true] %s513_s18  ;;  %s516_s9 = int_to_ptr.hbm [resolvable:$true] %s515_s9 }
  0x13   : > { %s829_s11 = sshra.s32 (!%p206_p10), %s516_s9, 4  ;;  %s835_s21 = scalar_lea.hbm (!%p206_p10), %s1097_s4, 256  ;;  %s830_s11 = int_to_ptr.hbm [resolvable:$true] %s829_s11 }
  0x14   : > { %v676_v0 = vld [vmem:[%s1094_s1 + $0x8] sm:$0xf]  ;;  %v692_v1 = vld [vmem:[%s1094_s1 + $0x8] sm:$0x30]  ;;  %vm355_vm0 = vcmask 1044480   ;;  %vm356_vm1 = vcmask 1045504   ;;  %p836_p1 = scmp.lt.s32.totalorder %s830_s11, %s1097_s4 }
  0x15   : > { %v677_v2 = vor.u32 %v692_v1, %v676_v0  ;;  %v895_v3 = vmov 65535   ;;  %s1108_s7 = smov (!%p242_p11, %s636_s7), 63  ;;  %v691_v7 = vld [vmem:[%s1094_s1] sm:$0xff]  ;;  %vm330_vm2 = vcmask 220160   ;;  %s831_s12 = scalar_lea.hbm %s830_s11, 64 }
  0x16   : > { %v357_v4 = vsel %vm355_vm0, 4294967295, %v895_v3  ;;  %s637_s10 = sshll.u32 %s1108_s7, 2  ;;  %v1002_v18 = vld [vmem:[%s1095_s2] ss:$0 sm:$0xff]  ;;  %p832_p12 = scmp.ne.s32.totalorder %s830_s11, %s831_s12 }
  0x17   : > { %v358_v5 = vsel %vm356_vm1, %v357_v4, 0  ;;  %s245_s13 = scalar_lea.vmem %s1093_s0, %s637_s10  ;;  %v1008_v20 = vld [vmem:[%s1096_s3] ss:$0 sm:$0xff]  ;;  %s500_s10 = scalar_lea.sflag [#allocation3], %s238_s26 }
  0x18   : > { %v360_v6 = vand.u32 %v677_v2, %v358_v5  ;;  %v693_v8 = vld [vmem:[%s245_s13] sm:$0xff]  ;;  %v695_v9 = vld [vmem:[%s245_s13 + $0x10] sm:$0xff]  ;;  %v694_v12 = vld [vmem:[%s245_s13 + $0x8] sm:$0xff]  ;;  %p833_p13 = pnand %p832_p12, %p963_p4  ;;  %p837_p2 = scmp.lt.s32.totalorder %s835_s21, %s831_s12 }
  0x19   : > { %v697_v10 = vld [vmem:[%s245_s13 + $0x20] sm:$0xff]  ;;  %v699_v11 = vld [vmem:[%s245_s13 + $0x30] sm:$0xff]  ;;  %v696_v13 = vld [vmem:[%s245_s13 + $0x18] sm:$0xff] }
  0x1a   : > { %368 = vmatpush.bf16.msra.mxu0 %v360_v6  ;;  %749 = vmatpush.bf16.msra.mxu1 %v360_v6  ;;  %v698_v14 = vld [vmem:[%s245_s13 + $0x28] sm:$0xff]  ;;  %v700_v15 = vld [vmem:[%s245_s13 + $0x38] sm:$0xff]  ;;  %p834_p0 = pneg %p833_p13  ;;  %p838_p3 = por %p837_p2, %p836_p1 }
  0x1b   : > { %750 = vmatpush.bf16.msra.mxu2 %v360_v6  ;;  %751 = vmatpush.bf16.msra.mxu3 %v360_v6 }
  0x1c   : > { %p839_p5 = pnand %p838_p3, %p834_p0 }
  0x1e   : > { %369 = vmatpush.bf16.msra.mxu0 %v691_v7  ;;  %752 = vmatpush.bf16.msra.mxu1 %v691_v7 }
  0x1f   : > { %753 = vmatpush.bf16.msra.mxu2 %v691_v7  ;;  %754 = vmatpush.bf16.msra.mxu3 %v691_v7 }
  0x21   : > { %678 = vmatmul.msk.bf16.vlgmr.msra.gmra.mxu0 %vm330_vm2, %v693_v8  ;;  %680 = vmatmul.msk.bf16.vlgmr.msra.gmra.mxu1 %vm330_vm2, %v695_v9 }
  0x22   : > { %682 = vmatmul.msk.bf16.vlgmr.msra.gmra.mxu2 %vm330_vm2, %v697_v10  ;;  %684 = vmatmul.msk.bf16.vlgmr.msra.gmra.mxu3 %vm330_vm2, %v699_v11 }
  0x31   : > { %679 = vmatmul.msk.bf16.gmra.mxu0 %vm330_vm2, %v694_v12  ;;  %681 = vmatmul.msk.bf16.gmra.mxu1 %vm330_vm2, %v696_v13 }
  0x32   : > { %683 = vmatmul.msk.bf16.gmra.mxu2 %vm330_vm2, %v698_v14  ;;  %685 = vmatmul.msk.bf16.gmra.mxu3 %vm330_vm2, %v700_v15 }
  0x9e   : > { %v371_v16 = vpop.f32.mrf.mxu0  ;;  %v381_v17 = vpop.f32.mrf.mxu1 }
  0x9f   : > { %v415_v19 = vmul.f32 %v1002_v18, %v371_v16  ;;  %v419_v21 = vmul.f32 %v1002_v18, %v381_v17 }
  0xa1   : > { %v435_v26 = vadd.f32 %v1008_v20, %v415_v19  ;;  %v439_v27 = vadd.f32 %v1008_v20, %v419_v21 }
  0xa3   : > { %v451_v34 = vmax.f32 %v435_v26, 0.0  ;;  %v455_v35 = vmax.f32 %v439_v27, 0.0 }
  0xa5   : > { %v391_v22 = vpop.f32.mrf.mxu2  ;;  %v401_v23 = vpop.f32.mrf.mxu3 }
  0xa6   : > { %v373_v24 = vpop.f32.mrf.mxu0  ;;  %v383_v25 = vpop.f32.mrf.mxu1  ;;  %v423_v32 = vmul.f32 %v1002_v18, %v391_v22  ;;  %v427_v33 = vmul.f32 %v1002_v18, %v401_v23 }
  0xa7   : > { %v416_v28 = vmul.f32 %v1002_v18, %v373_v24  ;;  %v420_v29 = vmul.f32 %v1002_v18, %v383_v25 }
  0xa8   : > { %v443_v42 = vadd.f32 %v1008_v20, %v423_v32  ;;  %v447_v43 = vadd.f32 %v1008_v20, %v427_v33 }
  0xa9   : > { %v436_v30 = vadd.f32 %v1008_v20, %v416_v28  ;;  %v440_v31 = vadd.f32 %v1008_v20, %v420_v29 }
  0xaa   : > { %v459_v50 = vmax.f32 %v443_v42, 0.0  ;;  %v463_v51 = vmax.f32 %v447_v43, 0.0 }
  0xab   : > { %v452_v36 = vmax.f32 %v436_v30, 0.0  ;;  %v456_v37 = vmax.f32 %v440_v31, 0.0 }
  0xad   : > { %v705_v38 = vpack.c.bf16 %v452_v36, %v451_v34  ;;  %v715_v39 = vpack.c.bf16 %v456_v37, %v455_v35  ;;  %v393_v40 = vpop.f32.mrf.mxu2  ;;  %v403_v41 = vpop.f32.mrf.mxu3 }
  0xae   : > { %v424_v44 = vmul.f32 %v1002_v18, %v393_v40  ;;  %v428_v45 = vmul.f32 %v1002_v18, %v403_v41  ;;  %v376_v46 = vpop.f32.mrf.mxu0  ;;  %v386_v47 = vpop.f32.mrf.mxu1 }
  0xaf   : > { %706 = vst [vmem:[%s1026_s30] sm:$0xff] %v705_v38   ;;  %v417_v54 = vmul.f32 %v1002_v18, %v376_v46  ;;  %v421_v55 = vmul.f32 %v1002_v18, %v386_v47 }
  0xb0   : > { %743 = vst [vmem:[%s1026_s30 + $0x10] sm:$0xff] %v715_v39   ;;  %v444_v48 = vadd.f32 %v1008_v20, %v424_v44  ;;  %v448_v49 = vadd.f32 %v1008_v20, %v428_v45 }
  0xb1   : > { %v437_v62 = vadd.f32 %v1008_v20, %v417_v54  ;;  %v441_v63 = vadd.f32 %v1008_v20, %v421_v55 }
  0xb2   : > { %v460_v52 = vmax.f32 %v444_v48, 0.0  ;;  %v464_v53 = vmax.f32 %v448_v49, 0.0 }
  0xb3   : > { %v453_v6 = vmax.f32 %v437_v62, 0.0  ;;  %v457_v7 = vmax.f32 %v441_v63, 0.0 }
  0xb4   : > { %v725_v56 = vpack.c.bf16 %v460_v52, %v459_v50  ;;  %v735_v57 = vpack.c.bf16 %v464_v53, %v463_v51 }
  0xb5   : > { %v396_v58 = vpop.f32.mrf.mxu2  ;;  %v406_v59 = vpop.f32.mrf.mxu3 }
  0xb6   : > { %745 = vst [vmem:[%s1026_s30 + $0x20] sm:$0xff] %v725_v56   ;;  %v378_v60 = vpop.f32.mrf.mxu0  ;;  %v388_v61 = vpop.f32.mrf.mxu1  ;;  %v425_v4 = vmul.f32 %v1002_v18, %v396_v58  ;;  %v429_v5 = vmul.f32 %v1002_v18, %v406_v59 }
  0xb7   : > { %747 = vst [vmem:[%s1026_s30 + $0x30] sm:$0xff] %v735_v57   ;;  %v418_v0 = vmul.f32 %v1002_v18, %v378_v60  ;;  %v422_v1 = vmul.f32 %v1002_v18, %v388_v61 }
  0xb8   : > { %v445_v14 = vadd.f32 %v1008_v20, %v425_v4  ;;  %v449_v15 = vadd.f32 %v1008_v20, %v429_v5 }
  0xb9   : > { %v438_v2 = vadd.f32 %v1008_v20, %v418_v0  ;;  %v442_v3 = vadd.f32 %v1008_v20, %v422_v1 }
  0xba   : > { %v461_v22 = vmax.f32 %v445_v14, 0.0  ;;  %v465_v23 = vmax.f32 %v449_v15, 0.0 }
  0xbb   : > { %v454_v8 = vmax.f32 %v438_v2, 0.0  ;;  %v458_v9 = vmax.f32 %v442_v3, 0.0 }
  0xbd   : > { %v710_v10 = vpack.c.bf16 %v454_v8, %v453_v6  ;;  %v720_v11 = vpack.c.bf16 %v458_v9, %v457_v7  ;;  %v398_v12 = vpop.f32.mrf.mxu2  ;;  %v408_v13 = vpop.f32.mrf.mxu3 }
  0xbe   : > { %v426_v16 = vmul.f32 %v1002_v18, %v398_v12  ;;  %v430_v17 = vmul.f32 %v1002_v18, %v408_v13 }
  0xbf   : > { %742 = vst [vmem:[%s1026_s30 + $0x8] sm:$0xff] %v710_v10  }
  0xc0   : > { %744 = vst [vmem:[%s1026_s30 + $0x18] sm:$0xff] %v720_v11   ;;  %v446_v19 = vadd.f32 %v1008_v20, %v426_v16  ;;  %v450_v21 = vadd.f32 %v1008_v20, %v430_v17 }
  0xc2   : > { %v462_v24 = vmax.f32 %v446_v19, 0.0  ;;  %v466_v18 = vmax.f32 %v450_v21, 0.0 }
  0xc4   : > { %v730_v25 = vpack.c.bf16 %v462_v24, %v461_v22  ;;  %v740_v26 = vpack.c.bf16 %v466_v18, %v465_v23 }
  0xc6   : > { %746 = vst [vmem:[%s1026_s30 + $0x28] sm:$0xff] %v730_v25  }
  0xc7   : > { %748 = vst [vmem:[%s1026_s30 + $0x38] sm:$0xff] %v740_v26  }
  0xc8   : > { %842 = shalt.err (!%p839_p5)
}
  0xc9   : > { %s896_s26 = smov 64   ;;  %s897_s29 = smov 4  }
  0xca   : > { %755 = dma.vmem_to_hbm [thread:$0]  (%p963_p4), %s514_s18, 1024, %s516_s9, %s500_s10, %s896_s26, %s896_s26, %s897_s29  }
  0xcb PF: > { %p761_p6 = scmp.ge.s32.totalorder %s893_s20, 2  ;;  %s530_s30 = sand.u32 1, %s873_s15  }
  0xcc   : > { %s531_s5 = scalar_lea.sflag [#allocation3], %s530_s30 }
  0xcd   : > { %p758_p7 = pnand %p761_p6, %p970_p8 }
  0xcf   : > { %p759_p9 = pneg %p758_p7 }
  0xd1   : > { %868 = dma.done.wait (%p759_p9), %s531_s5, 1024  }
  0xd2   : > { %870 = vsyncadd (%p759_p9), %s531_s5, 4294966272  ;;  %s17_s20 = sadd.s32 1, %s893_s20   ;;  %s1100_s15 = smov %s877_s16 }
  0xd3   : > { %p14_p10 = scmp.ge.s32.totalorder %s17_s20, 6   ;;  %s1101_s16 = smov %s881_s17 }
  0xd4   : > { %s1102_s17 = smov %s976_s28  ;;  %s1103_s18 = smov %s889_s19 }
  0xd5   : > { %s1104_s19 = smov %s1106_s23  ;;  %16 = sbr.rel (!%p14_p10) target bundleno = 4 (0x4), region = 80 }
  0xda   :  { %537 = vsyncpa [#allocation3], 1 }
  0xdb   :  { %539 = vsyncpa [#allocation3 + $0x1], 1 }

</bundles_post_ra>
